<compile_context>
chip_gen: v7x
topology: tpu7x:2x2x1
jax: 0.10.0
libtpu: 0.0.40
codegen_flags: <defaults>
</compile_context>

<pallas_src>
import functools
import math

import jax
import jax.numpy as jnp
from jax.experimental import pallas as pl
from jax.experimental.pallas import tpu as pltpu


@functools.lru_cache(maxsize=None)
def _tensorcores_per_device() -> int:
    """TensorCores a single 'parallel' grid axis can shard over on one device."""
    try:
        kind = jax.devices()[0].device_kind.lower()
    except Exception:  # pragma: no cover - no device visible
        return 1
    # Dual-TensorCore devices (megacore v4 / v5p, dual-TC v7x).
    if any(tag in kind for tag in ("v4", "v5p", "v7", "7x")):
        return 2
    return 1


def _pick_graphs_per_step(batch: int, target_steps: int) -> int:
    """Largest divisor of `batch` that still yields >= target_steps grid steps.

    Falls back to a single big step when the divisor search would degenerate
    into many tiny steps (odd / prime batch): per-step overhead (~0.35 us)
    would dominate the microsecond-scale work.
    """
    best = 1
    for d in range(1, batch + 1):
        if batch % d == 0 and batch // d >= target_steps:
            best = d
    if batch // best > 2 * target_steps:
        best = batch
    return best


def _graph_kernel(w_rel_ref, x_ref, relmask_ref, w_head_ref, out_ref):
    """Refs:
      w_rel_ref   : (R,)          SMEM (scalar prefetch) rel_weight Linear weight
      x_ref       : (Bt, N, D)    VMEM node embeddings, Bt graphs of this step
      relmask_ref : (R+1, N, N)   VMEM [relation transposed to (R,N,N); rel_mask]
      w_head_ref  : (1, D)        VMEM head_weight Linear weight
      out_ref     : (1, N, Bt*D)  VMEM outputs, graphs packed along the lane axis
    """
    R = relmask_ref.shape[0] - 1
    Bt, N, D = x_ref.shape

    # base[i, j] = rel_mask[i, j] + sum_r w_rel[r] * relation[i, j, r]
    # (all Linear biases and the tail term cancel in the dim-0 softmax).
    # Unrolled scalar FMAs on (N, N) tiles: pure VPU, no cross-lane reduce.
    base = relmask_ref[R] + w_rel_ref[0] * relmask_ref[0]
    for r in range(1, R):
        base = base + w_rel_ref[r] * relmask_ref[r]

    x = x_ref[...]                                        # (Bt, N, D)
    w_head = w_head_ref[...]                              # (1, D)

    # head[g, i] = <x[g, i, :], w_head> for all Bt graphs at once (one lane
    # reduce on the whole slab instead of Bt tiny ones).
    head = jnp.sum(x * w_head, axis=-1, keepdims=True)    # (Bt, N, 1)

    logits = base[None] + head                            # (Bt, N, N)

    # softmax over axis=1 (row / node-i axis of each graph), batched over Bt.
    m = jnp.max(logits, axis=1, keepdims=True)            # (Bt, 1, N)
    e = jnp.exp(logits - m)                               # (Bt, N, N)
    s = jnp.sum(e, axis=1, keepdims=True)                 # (Bt, 1, N)
    inv_s = pl.reciprocal(s, approx=True)                 # EUP slot (free-ish)
    inv_s = inv_s * (2.0 - s * inv_s)                     # one NR step -> f32 prec
    wm = e * inv_s                                        # (Bt, N, N)

    # outputs[g] = wm[g] @ x[g].  At small N the MXU push + result-FIFO drain
    # latency dominates an (N,N)x(N,D) matmul, so do it as N batched VPU
    # broadcast-FMAs; switch to a single batched MXU einsum only for large N.
    if N >= 128:
        acc = jnp.einsum("bij,bjd->bid", wm, x,
                         preferred_element_type=jnp.float32)
    else:
        acc = wm[:, :, 0:1] * x[:, 0:1, :]                # (Bt, N, D)
        for j in range(1, N):
            acc = acc + wm[:, :, j:j + 1] * x[:, j:j + 1, :]

    # Pack the Bt per-graph (N, D) results along the lane axis and do a single
    # lane-dense (unmasked) store.
    out_ref[0] = jnp.concatenate([acc[g] for g in range(Bt)], axis=-1)


def pack_graph_constants(relation, rel_mask):
    """One-time packing of the module's constant buffers.

    Call once at module init (NOT per forward): transposing relation to
    (R, N, N) and concatenating the mask is an extra HBM pass that should not
    be paid on every call.
    """
    rel_t = jnp.transpose(jnp.asarray(relation, jnp.float32), (2, 0, 1))   # (R,N,N)
    mask = jnp.asarray(rel_mask, jnp.float32)[None]                        # (1,N,N)
    return jnp.concatenate([rel_t, mask], axis=0)                          # (R+1,N,N)


@jax.jit
def graph_module_forward_packed(inputs, relmask_packed, w_rel, w_head):
    """Forward of GraphModule (inner_prod=False) from pre-packed constants.

    inputs: (N, D) single graph or (B, N, D) batch of graphs.
    relmask_packed: (R+1, N, N) from pack_graph_constants.
    w_rel: rel_weight Linear weight (1, R) / (R,).  w_head: (1, D) / (D,).
    Biases and tail_weight cancel exactly in the dim-0 softmax, so they are
    not needed here (see graph_module_forward for the parity interface).
    """
    squeeze = inputs.ndim == 2
    x = inputs[None] if squeeze else inputs                  # (B, N, D)
    B, N, D = x.shape
    R = relmask_packed.shape[0] - 1

    w_rel_vec = w_rel.reshape(-1).astype(jnp.float32)        # (R,)  -> SMEM
    w_head_row = w_head.reshape(1, D).astype(jnp.float32)    # (1, D)

    bt = _pick_graphs_per_step(B, _tensorcores_per_device())
    steps = B // bt

    out_packed = pl.pallas_call(
        _graph_kernel,
        out_shape=jax.ShapeDtypeStruct((steps, N, bt * D), jnp.float32),
        grid_spec=pltpu.PrefetchScalarGridSpec(
            num_scalar_prefetch=1,                # w_rel -> SMEM
            grid=(steps,),
            in_specs=[
                # inputs: Bt graphs per step (batch-major)
                pl.BlockSpec((bt, N, D), lambda b, wr: (b, 0, 0)),
                # packed relation + mask: resident (constant index map)
                pl.BlockSpec((R + 1, N, N), lambda b, wr: (0, 0, 0)),
                # head weight row: resident
                pl.BlockSpec((1, D), lambda b, wr: (0, 0)),
            ],
            out_specs=pl.BlockSpec((1, N, bt * D), lambda b, wr: (b, 0, 0)),
        ),
        compiler_params=pltpu.CompilerParams(
            dimension_semantics=("parallel",)),    # shard steps across TCs
    )(w_rel_vec, x.astype(jnp.float32),
      relmask_packed.astype(jnp.float32), w_head_row)

    # Unpack lanes: out_packed[b, n, g*D:(g+1)*D] is graph (b*bt + g).
    out = out_packed.reshape(steps, N, bt, D)
    out = jnp.transpose(out, (0, 2, 1, 3)).reshape(B, N, D)
    return out[0] if squeeze else out


def graph_module_forward(inputs, relation, rel_mask,
                         w_rel, b_rel, w_head, b_head, w_tail, b_tail):
    """Interface-parity wrapper accepting all PyTorch module parameters.

    tail_weight and all biases are mathematically dead under softmax(dim=0)
    (constant along the normalized axis), so they are dropped.  For repeated
    calls, prefer pack_graph_constants(...) once + graph_module_forward_packed
    so the relation/mask repack is not paid on every forward.
    """
    del b_rel, b_head, w_tail, b_tail   # cancel exactly in the dim-0 softmax
    relmask_packed = pack_graph_constants(relation, rel_mask)
    return graph_module_forward_packed(inputs, relmask_packed, w_rel, w_head)


def graph_module_reference(inputs, relation, rel_mask,
                           w_rel, b_rel, w_head, b_head, w_tail, b_tail):
    """Pure-JAX mirror of the PyTorch forward (inner_prod=False), all terms."""
    N = inputs.shape[0]
    all_one = jnp.ones((N, 1), jnp.float32)
    rel_w = relation @ w_rel.T + b_rel                   # (N, N, 1)
    head = inputs @ w_head.T + b_head                    # (N, 1)
    tail = inputs @ w_tail.T + b_tail                    # (N, 1)
    weight = head @ all_one.T + all_one @ tail.T + rel_w[:, :, -1]
    wm = jax.nn.softmax(rel_mask + weight, axis=0)
    return wm @ inputs


# TODO(synk): inner_prod=True branch not implemented; the module default is False.

if __name__ == "__main__":
    B = 8    # number of graphs processed per call
    N = 8    # batch_size (number of graph nodes)
    D = 32   # fea_shape (LSTM embedding length)
    R = 4    # relation encoding dim (rel_encoding.shape[2])

    key = jax.random.PRNGKey(0)
    ks = jax.random.split(key, 9)

    inputs_b = jax.random.normal(ks[0], (B, N, D), jnp.float32)
    relation = jax.random.normal(ks[1], (N, N, R), jnp.float32)
    connected = jax.random.bernoulli(ks[2], 0.6, (N, N))
    rel_mask = jnp.where(connected, 0.0, -1e4).astype(jnp.float32)

    # PyTorch-style Linear init bounds
    lim_r = 1.0 / math.sqrt(R)
    lim_d = 1.0 / math.sqrt(D)
    w_rel = jax.random.uniform(ks[3], (1, R), jnp.float32, -lim_r, lim_r)
    b_rel = jax.random.uniform(ks[4], (), jnp.float32, -lim_r, lim_r)
    w_head = jax.random.uniform(ks[5], (1, D), jnp.float32, -lim_d, lim_d)
    b_head = jax.random.uniform(ks[6], (), jnp.float32, -lim_d, lim_d)
    w_tail = jax.random.uniform(ks[7], (1, D), jnp.float32, -lim_d, lim_d)
    b_tail = jax.random.uniform(ks[8], (), jnp.float32, -lim_d, lim_d)

    params = (w_rel, b_rel, w_head, b_head, w_tail, b_tail)

    # Constant buffers packed ONCE (module-init time), reused across calls.
    relmask_packed = pack_graph_constants(relation, rel_mask)

    # Batched path: B graphs, packed constants, lane-dense packed output.
    out_b = graph_module_forward_packed(inputs_b, relmask_packed, w_rel, w_head)
    out_b = jax.block_until_ready(out_b)
    ref_b = jax.vmap(
        lambda xi: graph_module_reference(xi, relation, rel_mask, *params))(inputs_b)
    assert out_b.shape == (B, N, D), out_b.shape
    assert jnp.allclose(out_b, ref_b, rtol=1e-4, atol=1e-4), \
        f"batched max abs err = {jnp.max(jnp.abs(out_b - ref_b))}"

    # Single-graph path via the module-parity interface: (N, D) -> (N, D).
    out_1 = graph_module_forward(inputs_b[0], relation, rel_mask, *params)
    out_1 = jax.block_until_ready(out_1)
    ref_1 = graph_module_reference(inputs_b[0], relation, rel_mask, *params)
    assert out_1.shape == (N, D), out_1.shape
    assert jnp.allclose(out_1, ref_1, rtol=1e-4, atol=1e-4), \
        f"single max abs err = {jnp.max(jnp.abs(out_1 - ref_1))}"

    print("KERNEL_OK")
</pallas_src>

<mosaic_0001>
module attributes {stable_mosaic.version = 11 : i64} {
  func.func @_graph_kernel(%arg0: i32, %arg1: memref<4xf32, #tpu.memory_space<smem>>, %arg2: memref<8x8x32xf32, #tpu.memory_space<vmem>>, %arg3: memref<5x8x8xf32, #tpu.memory_space<vmem>>, %arg4: memref<1x32xf32, #tpu.memory_space<vmem>>, %arg5: memref<1x8x256xf32, #tpu.memory_space<vmem>>) attributes {dimension_semantics = [#tpu.dimension_semantics<parallel>], iteration_bounds = array<i64: 1>, scalar_prefetch = 1 : i64, scratch_operands = 0 : i64, tpu.core_type = #tpu.core_type<tc>, window_params = [{transform_indices = @transform_0, window_bounds = array<i64: 8, 8, 32>}, {pipeline_mode = #tpu.pipeline_mode<synchronous>, transform_indices = @transform_1, window_bounds = array<i64: 5, 8, 8>}, {pipeline_mode = #tpu.pipeline_mode<synchronous>, transform_indices = @transform_2, window_bounds = array<i64: 1, 32>}, {transform_indices = @transform_3, window_bounds = array<i64: 1, 8, 256>}]} {
    %c4 = arith.constant 4 : index
    %c0 = arith.constant 0 : index
    %c0_0 = arith.constant 0 : index
    %0 = vector.load %arg3[%c4, %c0, %c0_0] : memref<5x8x8xf32, #tpu.memory_space<vmem>>, vector<1x8x8xf32>
    %1 = vector.shape_cast %0 : vector<1x8x8xf32> to vector<8x8xf32>
    %c0_1 = arith.constant 0 : index
    %2 = memref.load %arg1[%c0_1] : memref<4xf32, #tpu.memory_space<smem>>
    %c0_2 = arith.constant 0 : index
    %c0_3 = arith.constant 0 : index
    %c0_4 = arith.constant 0 : index
    %3 = vector.load %arg3[%c0_2, %c0_3, %c0_4] : memref<5x8x8xf32, #tpu.memory_space<vmem>>, vector<1x8x8xf32>
    %4 = vector.shape_cast %3 : vector<1x8x8xf32> to vector<8x8xf32>
    %5 = vector.broadcast %2 : f32 to vector<8x8xf32>
    %6 = arith.mulf %5, %4 : vector<8x8xf32>
    %7 = arith.addf %1, %6 : vector<8x8xf32>
    %c1 = arith.constant 1 : index
    %8 = memref.load %arg1[%c1] : memref<4xf32, #tpu.memory_space<smem>>
    %c1_5 = arith.constant 1 : index
    %c0_6 = arith.constant 0 : index
    %c0_7 = arith.constant 0 : index
    %9 = vector.load %arg3[%c1_5, %c0_6, %c0_7] : memref<5x8x8xf32, #tpu.memory_space<vmem>>, vector<1x8x8xf32>
    %10 = vector.shape_cast %9 : vector<1x8x8xf32> to vector<8x8xf32>
    %11 = vector.broadcast %8 : f32 to vector<8x8xf32>
    %12 = arith.mulf %11, %10 : vector<8x8xf32>
    %13 = arith.addf %7, %12 : vector<8x8xf32>
    %c2 = arith.constant 2 : index
    %14 = memref.load %arg1[%c2] : memref<4xf32, #tpu.memory_space<smem>>
    %c2_8 = arith.constant 2 : index
    %c0_9 = arith.constant 0 : index
    %c0_10 = arith.constant 0 : index
    %15 = vector.load %arg3[%c2_8, %c0_9, %c0_10] : memref<5x8x8xf32, #tpu.memory_space<vmem>>, vector<1x8x8xf32>
    %16 = vector.shape_cast %15 : vector<1x8x8xf32> to vector<8x8xf32>
    %17 = vector.broadcast %14 : f32 to vector<8x8xf32>
    %18 = arith.mulf %17, %16 : vector<8x8xf32>
    %19 = arith.addf %13, %18 : vector<8x8xf32>
    %c3 = arith.constant 3 : index
    %20 = memref.load %arg1[%c3] : memref<4xf32, #tpu.memory_space<smem>>
    %c3_11 = arith.constant 3 : index
    %c0_12 = arith.constant 0 : index
    %c0_13 = arith.constant 0 : index
    %21 = vector.load %arg3[%c3_11, %c0_12, %c0_13] : memref<5x8x8xf32, #tpu.memory_space<vmem>>, vector<1x8x8xf32>
    %22 = vector.shape_cast %21 : vector<1x8x8xf32> to vector<8x8xf32>
    %23 = vector.broadcast %20 : f32 to vector<8x8xf32>
    %24 = arith.mulf %23, %22 : vector<8x8xf32>
    %25 = arith.addf %19, %24 : vector<8x8xf32>
    %c0_14 = arith.constant 0 : index
    %c0_15 = arith.constant 0 : index
    %c0_16 = arith.constant 0 : index
    %26 = vector.load %arg2[%c0_14, %c0_15, %c0_16] : memref<8x8x32xf32, #tpu.memory_space<vmem>>, vector<8x8x32xf32>
    %c0_17 = arith.constant 0 : index
    %c0_18 = arith.constant 0 : index
    %27 = vector.load %arg4[%c0_17, %c0_18] : memref<1x32xf32, #tpu.memory_space<vmem>>, vector<1x32xf32>
    %28 = vector.shape_cast %27 : vector<1x32xf32> to vector<1x1x32xf32>
    %29 = vector.broadcast %28 : vector<1x1x32xf32> to vector<8x8x32xf32>
    %30 = arith.mulf %26, %29 : vector<8x8x32xf32>
    %cst = arith.constant dense<0.000000e+00> : vector<8x8xf32>
    %31 = vector.multi_reduction <add>, %30, %cst [2] : vector<8x8x32xf32> to vector<8x8xf32>
    %32 = vector.shape_cast %31 : vector<8x8xf32> to vector<8x8x1xf32>
    %33 = vector.shape_cast %25 : vector<8x8xf32> to vector<1x8x8xf32>
    %34 = vector.broadcast %33 : vector<1x8x8xf32> to vector<8x8x8xf32>
    %35 = vector.broadcast %32 : vector<8x8x1xf32> to vector<8x8x8xf32>
    %36 = arith.addf %34, %35 : vector<8x8x8xf32>
    %cst_19 = arith.constant dense<0xFF800000> : vector<8x8xf32>
    %37 = vector.multi_reduction <maximumf>, %36, %cst_19 [1] : vector<8x8x8xf32> to vector<8x8xf32>
    %38 = vector.shape_cast %37 : vector<8x8xf32> to vector<8x1x8xf32>
    %39 = vector.broadcast %38 : vector<8x1x8xf32> to vector<8x8x8xf32>
    %40 = arith.subf %36, %39 : vector<8x8x8xf32>
    %41 = math.exp %40 : vector<8x8x8xf32>
    %cst_20 = arith.constant dense<0.000000e+00> : vector<8x8xf32>
    %42 = vector.multi_reduction <add>, %41, %cst_20 [1] : vector<8x8x8xf32> to vector<8x8xf32>
    %43 = vector.shape_cast %42 : vector<8x8xf32> to vector<8x1x8xf32>
    %44 = tpu.reciprocal %43 {approx = true} : vector<8x1x8xf32> -> vector<8x1x8xf32>
    %45 = arith.mulf %43, %44 : vector<8x1x8xf32>
    %cst_21 = arith.constant 2.000000e+00 : f32
    %46 = vector.broadcast %cst_21 : f32 to vector<8x1x8xf32>
    %47 = arith.subf %46, %45 : vector<8x1x8xf32>
    %48 = arith.mulf %44, %47 : vector<8x1x8xf32>
    %49 = vector.broadcast %48 : vector<8x1x8xf32> to vector<8x8x8xf32>
    %50 = arith.mulf %41, %49 : vector<8x8x8xf32>
    %51 = vector.extract_strided_slice %50 {offsets = [0, 0, 0], sizes = [8, 8, 1], strides = [1, 1, 1]} : vector<8x8x8xf32> to vector<8x8x1xf32>
    %52 = vector.extract_strided_slice %26 {offsets = [0, 0, 0], sizes = [8, 1, 32], strides = [1, 1, 1]} : vector<8x8x32xf32> to vector<8x1x32xf32>
    %53 = vector.broadcast %51 : vector<8x8x1xf32> to vector<8x8x32xf32>
    %54 = vector.broadcast %52 : vector<8x1x32xf32> to vector<8x8x32xf32>
    %55 = arith.mulf %53, %54 : vector<8x8x32xf32>
    %56 = vector.extract_strided_slice %50 {offsets = [0, 0, 1], sizes = [8, 8, 1], strides = [1, 1, 1]} : vector<8x8x8xf32> to vector<8x8x1xf32>
    %57 = vector.extract_strided_slice %26 {offsets = [0, 1, 0], sizes = [8, 1, 32], strides = [1, 1, 1]} : vector<8x8x32xf32> to vector<8x1x32xf32>
    %58 = vector.broadcast %56 : vector<8x8x1xf32> to vector<8x8x32xf32>
    %59 = vector.broadcast %57 : vector<8x1x32xf32> to vector<8x8x32xf32>
    %60 = arith.mulf %58, %59 : vector<8x8x32xf32>
    %61 = arith.addf %55, %60 : vector<8x8x32xf32>
    %62 = vector.extract_strided_slice %50 {offsets = [0, 0, 2], sizes = [8, 8, 1], strides = [1, 1, 1]} : vector<8x8x8xf32> to vector<8x8x1xf32>
    %63 = vector.extract_strided_slice %26 {offsets = [0, 2, 0], sizes = [8, 1, 32], strides = [1, 1, 1]} : vector<8x8x32xf32> to vector<8x1x32xf32>
    %64 = vector.broadcast %62 : vector<8x8x1xf32> to vector<8x8x32xf32>
    %65 = vector.broadcast %63 : vector<8x1x32xf32> to vector<8x8x32xf32>
    %66 = arith.mulf %64, %65 : vector<8x8x32xf32>
    %67 = arith.addf %61, %66 : vector<8x8x32xf32>
    %68 = vector.extract_strided_slice %50 {offsets = [0, 0, 3], sizes = [8, 8, 1], strides = [1, 1, 1]} : vector<8x8x8xf32> to vector<8x8x1xf32>
    %69 = vector.extract_strided_slice %26 {offsets = [0, 3, 0], sizes = [8, 1, 32], strides = [1, 1, 1]} : vector<8x8x32xf32> to vector<8x1x32xf32>
    %70 = vector.broadcast %68 : vector<8x8x1xf32> to vector<8x8x32xf32>
    %71 = vector.broadcast %69 : vector<8x1x32xf32> to vector<8x8x32xf32>
    %72 = arith.mulf %70, %71 : vector<8x8x32xf32>
    %73 = arith.addf %67, %72 : vector<8x8x32xf32>
    %74 = vector.extract_strided_slice %50 {offsets = [0, 0, 4], sizes = [8, 8, 1], strides = [1, 1, 1]} : vector<8x8x8xf32> to vector<8x8x1xf32>
    %75 = vector.extract_strided_slice %26 {offsets = [0, 4, 0], sizes = [8, 1, 32], strides = [1, 1, 1]} : vector<8x8x32xf32> to vector<8x1x32xf32>
    %76 = vector.broadcast %74 : vector<8x8x1xf32> to vector<8x8x32xf32>
    %77 = vector.broadcast %75 : vector<8x1x32xf32> to vector<8x8x32xf32>
    %78 = arith.mulf %76, %77 : vector<8x8x32xf32>
    %79 = arith.addf %73, %78 : vector<8x8x32xf32>
    %80 = vector.extract_strided_slice %50 {offsets = [0, 0, 5], sizes = [8, 8, 1], strides = [1, 1, 1]} : vector<8x8x8xf32> to vector<8x8x1xf32>
    %81 = vector.extract_strided_slice %26 {offsets = [0, 5, 0], sizes = [8, 1, 32], strides = [1, 1, 1]} : vector<8x8x32xf32> to vector<8x1x32xf32>
    %82 = vector.broadcast %80 : vector<8x8x1xf32> to vector<8x8x32xf32>
    %83 = vector.broadcast %81 : vector<8x1x32xf32> to vector<8x8x32xf32>
    %84 = arith.mulf %82, %83 : vector<8x8x32xf32>
    %85 = arith.addf %79, %84 : vector<8x8x32xf32>
    %86 = vector.extract_strided_slice %50 {offsets = [0, 0, 6], sizes = [8, 8, 1], strides = [1, 1, 1]} : vector<8x8x8xf32> to vector<8x8x1xf32>
    %87 = vector.extract_strided_slice %26 {offsets = [0, 6, 0], sizes = [8, 1, 32], strides = [1, 1, 1]} : vector<8x8x32xf32> to vector<8x1x32xf32>
    %88 = vector.broadcast %86 : vector<8x8x1xf32> to vector<8x8x32xf32>
    %89 = vector.broadcast %87 : vector<8x1x32xf32> to vector<8x8x32xf32>
    %90 = arith.mulf %88, %89 : vector<8x8x32xf32>
    %91 = arith.addf %85, %90 : vector<8x8x32xf32>
    %92 = vector.extract_strided_slice %50 {offsets = [0, 0, 7], sizes = [8, 8, 1], strides = [1, 1, 1]} : vector<8x8x8xf32> to vector<8x8x1xf32>
    %93 = vector.extract_strided_slice %26 {offsets = [0, 7, 0], sizes = [8, 1, 32], strides = [1, 1, 1]} : vector<8x8x32xf32> to vector<8x1x32xf32>
    %94 = vector.broadcast %92 : vector<8x8x1xf32> to vector<8x8x32xf32>
    %95 = vector.broadcast %93 : vector<8x1x32xf32> to vector<8x8x32xf32>
    %96 = arith.mulf %94, %95 : vector<8x8x32xf32>
    %97 = arith.addf %91, %96 : vector<8x8x32xf32>
    %98 = vector.extract_strided_slice %97 {offsets = [0, 0, 0], sizes = [1, 8, 32], strides = [1, 1, 1]} : vector<8x8x32xf32> to vector<1x8x32xf32>
    %99 = vector.shape_cast %98 : vector<1x8x32xf32> to vector<8x32xf32>
    %100 = vector.extract_strided_slice %97 {offsets = [1, 0, 0], sizes = [1, 8, 32], strides = [1, 1, 1]} : vector<8x8x32xf32> to vector<1x8x32xf32>
    %101 = vector.shape_cast %100 : vector<1x8x32xf32> to vector<8x32xf32>
    %102 = vector.extract_strided_slice %97 {offsets = [2, 0, 0], sizes = [1, 8, 32], strides = [1, 1, 1]} : vector<8x8x32xf32> to vector<1x8x32xf32>
    %103 = vector.shape_cast %102 : vector<1x8x32xf32> to vector<8x32xf32>
    %104 = vector.extract_strided_slice %97 {offsets = [3, 0, 0], sizes = [1, 8, 32], strides = [1, 1, 1]} : vector<8x8x32xf32> to vector<1x8x32xf32>
    %105 = vector.shape_cast %104 : vector<1x8x32xf32> to vector<8x32xf32>
    %106 = vector.extract_strided_slice %97 {offsets = [4, 0, 0], sizes = [1, 8, 32], strides = [1, 1, 1]} : vector<8x8x32xf32> to vector<1x8x32xf32>
    %107 = vector.shape_cast %106 : vector<1x8x32xf32> to vector<8x32xf32>
    %108 = vector.extract_strided_slice %97 {offsets = [5, 0, 0], sizes = [1, 8, 32], strides = [1, 1, 1]} : vector<8x8x32xf32> to vector<1x8x32xf32>
    %109 = vector.shape_cast %108 : vector<1x8x32xf32> to vector<8x32xf32>
    %110 = vector.extract_strided_slice %97 {offsets = [6, 0, 0], sizes = [1, 8, 32], strides = [1, 1, 1]} : vector<8x8x32xf32> to vector<1x8x32xf32>
    %111 = vector.shape_cast %110 : vector<1x8x32xf32> to vector<8x32xf32>
    %112 = vector.extract_strided_slice %97 {offsets = [7, 0, 0], sizes = [1, 8, 32], strides = [1, 1, 1]} : vector<8x8x32xf32> to vector<1x8x32xf32>
    %113 = vector.shape_cast %112 : vector<1x8x32xf32> to vector<8x32xf32>
    %114 = tpu.concatenate %99, %101, %103, %105, %107, %109, %111, %113 in 1 : vector<8x32xf32>, vector<8x32xf32>, vector<8x32xf32>, vector<8x32xf32>, vector<8x32xf32>, vector<8x32xf32>, vector<8x32xf32>, vector<8x32xf32> -> vector<8x256xf32>
    %c0_22 = arith.constant 0 : index
    %c0_23 = arith.constant 0 : index
    %c0_24 = arith.constant 0 : index
    %115 = vector.load %arg5[%c0_22, %c0_23, %c0_24] : memref<1x8x256xf32, #tpu.memory_space<vmem>>, vector<1x8x256xf32>
    %116 = vector.shape_cast %115 : vector<1x8x256xf32> to vector<8x256xf32>
    %117 = vector.shape_cast %114 : vector<8x256xf32> to vector<1x8x256xf32>
    tpu.vector_store %arg5[%c0_22, %c0_23, %c0_24], %117 {strides = array<i32>} : memref<1x8x256xf32, #tpu.memory_space<vmem>>, vector<1x8x256xf32>,
    return
  }
  func.func @transform_0(%arg0: i32, %arg1: memref<4xf32, #tpu.memory_space<smem>>) -> (i32, i32, i32) {
    %c0_i32 = arith.constant 0 : i32
    %c0_i32_0 = arith.constant 0 : i32
    %c0_i32_1 = arith.constant 0 : i32
    return %arg0, %c0_i32, %c0_i32_0 : i32, i32, i32
  }
  func.func @transform_1(%arg0: i32, %arg1: memref<4xf32, #tpu.memory_space<smem>>) -> (i32, i32, i32) {
    %c0_i32 = arith.constant 0 : i32
    %c0_i32_0 = arith.constant 0 : i32
    %c0_i32_1 = arith.constant 0 : i32
    %c0_i32_2 = arith.constant 0 : i32
    return %c0_i32, %c0_i32_0, %c0_i32_1 : i32, i32, i32
  }
  func.func @transform_2(%arg0: i32, %arg1: memref<4xf32, #tpu.memory_space<smem>>) -> (i32, i32) {
    %c0_i32 = arith.constant 0 : i32
    %c0_i32_0 = arith.constant 0 : i32
    %c0_i32_1 = arith.constant 0 : i32
    return %c0_i32, %c0_i32_0 : i32, i32
  }
  func.func @transform_3(%arg0: i32, %arg1: memref<4xf32, #tpu.memory_space<smem>>) -> (i32, i32, i32) {
    %c0_i32 = arith.constant 0 : i32
    %c0_i32_0 = arith.constant 0 : i32
    %c0_i32_1 = arith.constant 0 : i32
    return %arg0, %c0_i32, %c0_i32_0 : i32, i32, i32
  }
}

</mosaic_0001>

<bundles_post_ra>
// kernel: graph_module_forward_packed.1
= control target key start
LH: loop header
LB: loop body
LE: loop exit
PB: predicated region body
PF: predicated region fallthrough
CT: control target
= control target key end

     0   :  { %s1607_s0 = inlined_call_operand.vmem [shape: f32[4], index: 0, kind: input, shape index: {}]   ;;  %s1608_s1 = inlined_call_operand.hbm [shape: f32[8,8,32], index: 1, kind: input, shape index: {}]   ;;  %s1609_s2 = inlined_call_operand.hbm [shape: f32[5,8,8], index: 2, kind: input, shape index: {}]   ;;  %s1610_s3 = inlined_call_operand.vmem [shape: f32[1,32], index: 3, kind: input, shape index: {}]   ;;  %s1611_s4 = inlined_call_operand.vmem [shape: f32[1,8,256], index: 4, kind: output, shape index: {}]  }
   0x1   :  { %s9_s17 = sshll.u32 %s1607_s0, 4  ;;  %s10_s17 = int_to_ptr.vmem [resolvable:$true] %s9_s17 }
   0x2   :  { %s1069_s18 = scalar_lea.vmem %s10_s17, 16  ;;  %p1074_p1 = scmp.lt.s32.totalorder %s10_s17, %s10_s17 }
   0x3   :  { %p1070_p0 = scmp.ne.s32.totalorder %s10_s17, %s1069_s18  ;;  %p1075_p2 = scmp.lt.s32.totalorder %s1069_s18, %s1069_s18 }
   0x5   :  { %p1076_p3 = por %p1075_p2, %p1074_p1 }
   0x7   :  { %p1077_p4 = pnand %p1076_p3, %p1070_p0 }
   0x9   :  { %1080 = shalt.err (!%p1077_p4)  }
   0xa   :  { %s1131_s19 = smov [#allocation3]  }
   0xb   :  { %12 = dma.vmem_to_smem %s10_s17, 16, %s1131_s19, [#allocation2] }
   0xc   :  { %1125 = dma.done.wait [#allocation2], 16 }
   0xd   :  { %1126 = vsyncadd [#allocation2], 4294967280 }
   0xe   :  { %14 = sfence }
   0xf   :  { %15 = vsyncpa [#allocation5], 0 }
  0x10   :  { %16 = vsyncpa [#allocation7], 0  ;;  %s1132_s20 = smov [#allocation4]   ;;  %s1081_s23 = scalar_lea.hbm %s1608_s1, 1024 }
  0x11   :  { %s22_s21 = sshll.u32 %s1132_s20, 4  ;;  %p1082_p5 = scmp.ne.s32.totalorder %s1608_s1, %s1081_s23  ;;  %s23_s21 = int_to_ptr.vmem [resolvable:$true] %s22_s21 }
  0x12   :  { %p1085_p6 = scmp.lt.u32.totalorder %s1081_s23, %s1608_s1 }
  0x14   :  { %p1087_p7 = pnand %p1085_p6, %p1082_p5 }
  0x16   :  { %1090 = shalt.err (!%p1087_p7)
}
  0x17   :  { %s1091_s28 = scalar_lea.vmem %s23_s21, 1024  ;;  %p1096_p9 = scmp.lt.s32.totalorder %s23_s21, %s23_s21 }
  0x18   :  { %p1092_p8 = scmp.ne.s32.totalorder %s23_s21, %s1091_s28  ;;  %p1097_p10 = scmp.lt.s32.totalorder %s1091_s28, %s1091_s28 }
  0x1a   :  { %p1098_p11 = por %p1097_p10, %p1096_p9 }
  0x1c   :  { %p1099_p12 = pnand %p1098_p11, %p1092_p8 }
  0x1e   :  { %1102 = shalt.err (!%p1099_p12)
}
  0x1f   :  { %s1133_s29 = smov 128   ;;  %s1134_s30 = smov 8  }
  0x20   :  { %28 = dma.hbm_to_vmem [thread:$0]  %s1608_s1, 1024, %s23_s21, [#allocation5], %s1133_s29, %s1133_s29, %s1134_s30  }
  0x21   :  { %s1135_s7 = smov [#allocation6]   ;;  %s1103_s11 = scalar_lea.hbm %s1609_s2, 640 }
  0x22   :  { %s34_s8 = sshll.u32 %s1135_s7, 4  ;;  %p1104_p13 = scmp.ne.s32.totalorder %s1609_s2, %s1103_s11  ;;  %s35_s8 = int_to_ptr.vmem [resolvable:$true] %s34_s8 }
  0x23   :  { %p1107_p0 = scmp.lt.u32.totalorder %s1103_s11, %s1609_s2 }
  0x25   :  { %p1109_p1 = pnand %p1107_p0, %p1104_p13 }
  0x27   :  { %1112 = shalt.err (!%p1109_p1)
}
  0x28   :  { %s1113_s16 = scalar_lea.vmem %s35_s8, 640  ;;  %p1118_p3 = scmp.lt.s32.totalorder %s35_s8, %s35_s8 }
  0x29   :  { %p1114_p2 = scmp.ne.s32.totalorder %s35_s8, %s1113_s16  ;;  %p1119_p4 = scmp.lt.s32.totalorder %s1113_s16, %s1113_s16 }
  0x2b   :  { %p1120_p5 = por %p1119_p4, %p1118_p3 }
  0x2d   :  { %p1121_p6 = pnand %p1120_p5, %p1114_p2 }
  0x2f   :  { %1124 = shalt.err (!%p1121_p6)
}
  0x30   :  { %40 = dma.hbm_to_vmem [thread:$0]  %s1609_s2, 640, %s35_s8, [#allocation7], %s1133_s29, %s1133_s29, %s1134_s30  }
  0x31   :  { %1127 = dma.done.wait [#allocation5], 1024  }
  0x32   :  { %1128 = vsyncadd [#allocation5], 4294966272 }
  0x33   :  { %1129 = dma.done.wait [#allocation7], 640  }
  0x34   :  { %1130 = vsyncadd [#allocation7], 4294966656  ;;  %v1199_v0 = vld [vmem:[#allocation4 + $0x10] sm:$0xff]  ;;  %v990_v1 = vld [vmem:[%s1610_s3] ss:$0 sm:$0xff]  ;;  %vm97_vm0 = vcmask 261120  }
  0x35   :  { %v1204_v2 = vld [vmem:[#allocation4] sm:$0xff]  ;;  %v91_v3 = vmul.f32 %v990_v1, %v1199_v0  ;;  %v1208_v5 = vld [vmem:[#allocation4 + $0x18] sm:$0xff]  ;;  %v1210_v6 = vld [vmem:[#allocation4 + $0x8] sm:$0xff]  ;;  %v1136_v25 = vmov 0   ;;  %s51_s2 = sld [smem:[#allocation3]]  ;;  %s987_s3 = sld [smem:[#allocation3 + $0x1]] }
  0x36   :  { %v89_v4 = vmul.f32 %v990_v1, %v1204_v2  ;;  %v92_v7 = vmul.f32 %v990_v1, %v1208_v5  ;;  %v90_v8 = vmul.f32 %v990_v1, %v1210_v6  ;;  %v1214_v9 = vld [vmem:[#allocation4 + $0x28] sm:$0xff]  ;;  %v1216_v10 = vld [vmem:[#allocation4 + $0x20] sm:$0xff]  ;;  %v1224_v17 = vld [vmem:[#allocation4 + $0x38] sm:$0xff]  ;;  %1007 = vset.pattern.permute.xlu0 %v1136_v25  ;;  %1008 = vset.pattern.permute.xlu1 %v1136_v25  ;;  %s988_s20 = sld [smem:[#allocation3 + $0x2]]  ;;  %s989_s21 = sld [smem:[#allocation3 + $0x3]]  ;;  %vm130_vm1 = vcmask 64512  }
  0x37   :  { %v104_v11 = vsel %vm97_vm0, %v91_v3, 0.0  ;;  %v94_v15 = vmul.f32 %v990_v1, %v1214_v9  ;;  %v93_v16 = vmul.f32 %v990_v1, %v1216_v10  ;;  %v1226_v18 = vld [vmem:[#allocation4 + $0x30] sm:$0xff]  ;;  %v96_v21 = vmul.f32 %v990_v1, %v1224_v17  ;;  %v52_v26 = vld [vmem:[#allocation6] sm:$0xff]  ;;  %v58_v30 = vld [vmem:[#allocation6 + $0x8] sm:$0xff]  ;;  %s1144_s22 = smov 32   ;;  %s1145_s0 = smov 64  }
  0x38   :  { %v98_v12 = vsel %vm97_vm0, %v89_v4, 0.0  ;;  %105 = vadd.xlane.f32.xlu1 %v104_v11  ;;  %v107_v13 = vsel %vm97_vm0, %v92_v7, 0.0  ;;  %v101_v14 = vsel %vm97_vm0, %v90_v8, 0.0  ;;  %v95_v22 = vmul.f32 %v990_v1, %v1226_v18  ;;  %v50_v29 = vld [vmem:[#allocation6 + $0x20] sm:$0xff]  ;;  %v64_v34 = vld [vmem:[#allocation6 + $0x10] sm:$0xff]  ;;  %v70_v38 = vld [vmem:[#allocation6 + $0x18] sm:$0xff] }
  0x39   :  { %99 = vadd.xlane.f32.xlu0 %v98_v12  ;;  %v113_v19 = vsel %vm97_vm0, %v94_v15, 0.0  ;;  %v110_v20 = vsel %vm97_vm0, %v93_v16, 0.0  ;;  %v119_v23 = vsel %vm97_vm0, %v96_v21, 0.0  ;;  %s1146_s23 = smov 96   ;;  %vm972_vm2 = vcmask 523264  }
  0x3a   :  { %v116_v24 = vsel %vm97_vm0, %v95_v22, 0.0  ;;  %vm974_vm3 = vcmask 785408  }
  0x3b   :  { %v53_v27 = vstv %s51_s2  ;;  %v59_v31 = vstv %s987_s3 }
  0x3c   :  { %108 = vadd.xlane.f32.xlu1 %v107_v13  ;;  %v54_v28 = vmul.f32 %v53_v27, %v52_v26  ;;  %v60_v33 = vmul.f32 %v59_v31, %v58_v30  ;;  %v65_v35 = vstv %s988_s20  ;;  %v71_v39 = vstv %s989_s21 }
  0x3d   :  { %102 = vadd.xlane.f32.xlu0 %v101_v14  ;;  %v66_v37 = vmul.f32 %v65_v35, %v64_v34  ;;  %v72_v41 = vmul.f32 %v71_v39, %v70_v38 }
  0x3e   :  { %v55_v32 = vadd.f32 %v54_v28, %v50_v29 }
  0x40   :  { %114 = vadd.xlane.f32.xlu1 %v113_v19  ;;  %v61_v36 = vadd.f32 %v60_v33, %v55_v32 }
  0x41   :  { %111 = vadd.xlane.f32.xlu0 %v110_v20 }
  0x42   :  { %v67_v40 = vadd.f32 %v66_v37, %v61_v36 }
  0x44   :  { %120 = vadd.xlane.f32.xlu1 %v119_v23  ;;  %v73_v42 = vadd.f32 %v72_v41, %v67_v40 }
  0x45   :  { %117 = vadd.xlane.f32.xlu0 %v116_v24 }
  0xc5   :  { %v106_v43 = vpop.xlane.xlu1 %105 }
  0xc6   :  { %v100_v44 = vpop.xlane.xlu0 %99  ;;  %v124_v45 = vadd.f32 %v106_v43, %v73_v42 }
  0xc7   :  { %v122_v46 = vadd.f32 %v100_v44, %v73_v42 }
  0xc8   :  { %v145_v47 = vsel %vm130_vm1, %v124_v45, -inf }
  0xc9   :  { %v131_v48 = vsel %vm130_vm1, %v122_v46, -inf  ;;  %v146_v49 = vrot.slane %v145_v47, 4  ;;  %v109_v51 = vpop.xlane.xlu1 %108 }
  0xca   :  { %v132_v50 = vrot.slane %v131_v48, 4  ;;  %v103_v52 = vpop.xlane.xlu0 %102  ;;  %v125_v53 = vadd.f32 %v109_v51, %v73_v42 }
  0xcb   :  { %v123_v54 = vadd.f32 %v103_v52, %v73_v42  ;;  %v147_v55 = vmax.f32 %v145_v47, %v146_v49 }
  0xcc   :  { %v133_v56 = vmax.f32 %v131_v48, %v132_v50  ;;  %v152_v57 = vsel %vm130_vm1, %v125_v53, -inf }
  0xcd   :  { %v138_v58 = vsel %vm130_vm1, %v123_v54, -inf  ;;  %v148_v59 = vrot.slane %v147_v55, 2  ;;  %v153_v61 = vrot.slane %v152_v57, 4  ;;  %v115_v63 = vpop.xlane.xlu1 %114 }
  0xce   :  { %v134_v60 = vrot.slane %v133_v56, 2  ;;  %v139_v62 = vrot.slane %v138_v58, 4  ;;  %v112_v1 = vpop.xlane.xlu0 %111  ;;  %v127_v3 = vadd.f32 %v115_v63, %v73_v42 }
  0xcf   :  { %v126_v4 = vadd.f32 %v112_v1, %v73_v42  ;;  %v149_v7 = vmax.f32 %v147_v55, %v148_v59  ;;  %v154_v11 = vmax.f32 %v152_v57, %v153_v61 }
  0xd0   :  { %v135_v8 = vmax.f32 %v133_v56, %v134_v60  ;;  %v140_v12 = vmax.f32 %v138_v58, %v139_v62  ;;  %v166_v13 = vsel %vm130_vm1, %v127_v3, -inf }
  0xd1   :  { %v159_v14 = vsel %vm130_vm1, %v126_v4, -inf  ;;  %v150_v15 = vrot.slane %v149_v7, 1  ;;  %v155_v19 = vrot.slane %v154_v11, 2  ;;  %v121_v21 = vpop.xlane.xlu1 %120  ;;  %v167_v23 = vrot.slane %v166_v13, 4 }
  0xd2   :  { %v136_v16 = vrot.slane %v135_v8, 1  ;;  %v141_v20 = vrot.slane %v140_v12, 2  ;;  %v118_v22 = vpop.xlane.xlu0 %117  ;;  %v160_v24 = vrot.slane %v159_v14, 4  ;;  %v129_v25 = vadd.f32 %v121_v21, %v73_v42 }
  0xd3   :  { %v128_v26 = vadd.f32 %v118_v22, %v73_v42  ;;  %v151_v27 = vmax.f32 %v149_v7, %v150_v15  ;;  %v156_v29 = vmax.f32 %v154_v11, %v155_v19  ;;  %v168_v31 = vmax.f32 %v166_v13, %v167_v23 }
  0xd4   :  { %v137_v28 = vmax.f32 %v135_v8, %v136_v16  ;;  %v142_v30 = vmax.f32 %v140_v12, %v141_v20  ;;  %v161_v32 = vmax.f32 %v159_v14, %v160_v24  ;;  %v180_v33 = vsel %vm130_vm1, %v129_v25, -inf }
  0xd5   :  { %v173_v34 = vsel %vm130_vm1, %v128_v26, -inf  ;;  %v189_v35 = vsub.f32 %v124_v45, %v151_v27  ;;  %v157_v37 = vrot.slane %v156_v29, 1  ;;  %v169_v39 = vrot.slane %v168_v31, 2 }
  0xd6   :  { %v187_v36 = vsub.f32 %v122_v46, %v137_v28  ;;  %v143_v38 = vrot.slane %v142_v30, 1  ;;  %v162_v40 = vrot.slane %v161_v32, 2  ;;  %v181_v41 = vrot.slane %v180_v33, 4 }
  0xd7   :  { %v174_v43 = vrot.slane %v173_v34, 4  ;;  %v199_v44 = vmul.f32 1.442695, %v189_v35  ;;  %v158_v47 = vmax.f32 %v156_v29, %v157_v37  ;;  %v170_v49 = vmax.f32 %v168_v31, %v169_v39 }
  0xd8   :  { %v195_v42 = vmul.f32 1.442695, %v187_v36  ;;  %v144_v48 = vmax.f32 %v142_v30, %v143_v38  ;;  %v163_v50 = vmax.f32 %v161_v32, %v162_v40  ;;  %v182_v51 = vmax.f32 %v180_v33, %v181_v41 }
  0xd9   :  { %v175_v52 = vmax.f32 %v173_v34, %v174_v43  ;;  %1030 = vpow2.f32 %v199_v44  ;;  %v190_v55 = vsub.f32 %v125_v53, %v158_v47  ;;  %v171_v45 = vrot.slane %v170_v49, 1 }
  0xda   :  { %v188_v56 = vsub.f32 %v123_v54, %v144_v48  ;;  %1032 = vpow2.f32 %v195_v42  ;;  %v164_v46 = vrot.slane %v163_v50, 1  ;;  %v183_v57 = vrot.slane %v182_v51, 2 }
  0xdb   :  { %v201_v58 = vmul.f32 1.442695, %v190_v55  ;;  %v176_v60 = vrot.slane %v175_v52, 2  ;;  %v172_v61 = vmax.f32 %v170_v49, %v171_v45 }
  0xdc   :  { %v197_v59 = vmul.f32 1.442695, %v188_v56  ;;  %v165_v62 = vmax.f32 %v163_v50, %v164_v46  ;;  %v184_v63 = vmax.f32 %v182_v51, %v183_v57 }
  0xdd   :  { %1034 = vpow2.f32 %v201_v58  ;;  %v177_v1 = vmax.f32 %v175_v52, %v176_v60  ;;  %v192_v7 = vsub.f32 %v127_v3, %v172_v61 }
  0xde   :  { %1036 = vpow2.f32 %v197_v59  ;;  %v191_v8 = vsub.f32 %v126_v4, %v165_v62  ;;  %v185_v11 = vrot.slane %v184_v63, 1 }
  0xdf   :  { %v178_v12 = vrot.slane %v177_v1, 1  ;;  %v205_v13 = vmul.f32 1.442695, %v192_v7 }
  0xe0   :  { %v203_v53 = vmul.f32 1.442695, %v191_v8  ;;  %v186_v54 = vmax.f32 %v184_v63, %v185_v11 }
  0xe1   :  { %v179_v14 = vmax.f32 %v177_v1, %v178_v12  ;;  %1038 = vpow2.f32 %v205_v13 }
  0xe2   :  { %v194_v15 = vsub.f32 %v129_v25, %v186_v54  ;;  %1040 = vpow2.f32 %v203_v53 }
  0xe3   :  { %v1242_v16 = vpop.eup %1030  ;;  %v193_v19 = vsub.f32 %v128_v26, %v179_v14 }
  0xe4   :  { %v1244_v20 = vpop.eup %1032  ;;  %v225_v21 = vsel %vm130_vm1, %v1242_v16, 0.0  ;;  %v209_v22 = vmul.f32 1.442695, %v194_v15 }
  0xe5   :  { %v226_v3 = vrot.slane %v225_v21, 4  ;;  %v211_v4 = vsel %vm130_vm1, %v1244_v20, 0.0  ;;  %v207_v23 = vmul.f32 1.442695, %v193_v19 }
  0xe6   :  { %v212_v24 = vrot.slane %v211_v4, 4  ;;  %1042 = vpow2.f32 %v209_v22 }
  0xe7   :  { %v1250_v27 = vpop.eup %1034  ;;  %v227_v25 = vadd.f32 %v226_v3, %v225_v21  ;;  %1044 = vpow2.f32 %v207_v23 }
  0xe8   :  { %v1252_v28 = vpop.eup %1036  ;;  %v213_v26 = vadd.f32 %v212_v24, %v211_v4  ;;  %v232_v29 = vsel %vm130_vm1, %v1250_v27, 0.0 }
  0xe9   :  { %v228_v30 = vrot.slane %v227_v25, 2  ;;  %v233_v31 = vrot.slane %v232_v29, 4  ;;  %v218_v32 = vsel %vm130_vm1, %v1252_v28, 0.0 }
  0xea   :  { %v214_v33 = vrot.slane %v213_v26, 2  ;;  %v219_v34 = vrot.slane %v218_v32, 4 }
  0xeb   :  { %v229_v35 = vadd.f32 %v228_v30, %v227_v25  ;;  %v234_v36 = vadd.f32 %v233_v31, %v232_v29  ;;  %v1258_v37 = vpop.eup %1038 }
  0xec   :  { %v215_v38 = vadd.f32 %v214_v33, %v213_v26  ;;  %v220_v39 = vadd.f32 %v219_v34, %v218_v32  ;;  %v1260_v40 = vpop.eup %1040  ;;  %v246_v44 = vsel %vm130_vm1, %v1258_v37, 0.0 }
  0xed   :  { %v230_v41 = vrot.slane %v229_v35, 1  ;;  %v235_v43 = vrot.slane %v234_v36, 2  ;;  %v247_v48 = vrot.slane %v246_v44, 4  ;;  %v239_v49 = vsel %vm130_vm1, %v1260_v40, 0.0 }
  0xee   :  { %v216_v42 = vrot.slane %v215_v38, 1  ;;  %v221_v47 = vrot.slane %v220_v39, 2  ;;  %v240_v52 = vrot.slane %v239_v49, 4 }
  0xef   :  { %v231_v50 = vadd.f32 %v230_v41, %v229_v35  ;;  %v236_v51 = vadd.f32 %v235_v43, %v234_v36  ;;  %v248_v46 = vadd.f32 %v247_v48, %v246_v44 }
  0xf0   :  { %v1266_v55 = vpop.eup %1042  ;;  %v217_v56 = vadd.f32 %v216_v42, %v215_v38  ;;  %v222_v45 = vadd.f32 %v221_v47, %v220_v39  ;;  %v241_v59 = vadd.f32 %v240_v52, %v239_v49 }
  0xf1   :  { %v1268_v57 = vpop.eup %1044  ;;  %1046 = vrcp.f32 %v231_v50  ;;  %v237_v58 = vrot.slane %v236_v51, 1  ;;  %v260_v60 = vsel %vm130_vm1, %v1266_v55, 0.0  ;;  %v249_v62 = vrot.slane %v248_v46, 2 }
  0xf2   :  { %1048 = vrcp.f32 %v217_v56  ;;  %v223_v61 = vrot.slane %v222_v45, 1  ;;  %v261_v63 = vrot.slane %v260_v60, 4  ;;  %v242_v7 = vrot.slane %v241_v59, 2 }
  0xf3   :  { %v238_v1 = vadd.f32 %v237_v58, %v236_v51  ;;  %v253_v8 = vsel %vm130_vm1, %v1268_v57, 0.0  ;;  %v250_v12 = vadd.f32 %v249_v62, %v248_v46  ;;  %v1137_v58 = vmov 1  }
  0xf4   :  { %v224_v11 = vadd.f32 %v223_v61, %v222_v45  ;;  %v262_v13 = vadd.f32 %v261_v63, %v260_v60  ;;  %v254_v53 = vrot.slane %v253_v8, 4  ;;  %v243_v54 = vadd.f32 %v242_v7, %v241_v59 }
  0xf5   :  { %1050 = vrcp.f32 %v238_v1  ;;  %v251_v14 = vrot.slane %v250_v12, 1 }
  0xf6   :  { %1052 = vrcp.f32 %v224_v11  ;;  %v263_v15 = vrot.slane %v262_v13, 2  ;;  %v255_v19 = vadd.f32 %v254_v53, %v253_v8  ;;  %v244_v21 = vrot.slane %v243_v54, 1 }
  0xf7   :  { %v252_v4 = vadd.f32 %v251_v14, %v250_v12 }
  0xf8   :  { %v256_v22 = vrot.slane %v255_v19, 2  ;;  %v245_v3 = vadd.f32 %v244_v21, %v243_v54  ;;  %v264_v23 = vadd.f32 %v263_v15, %v262_v13  ;;  %v1141_v15 = vmov 5  }
  0xf9   :  { %v1143_v21 = vmov 7  }
  0xfa   :  { %v257_v24 = vadd.f32 %v256_v22, %v255_v19  ;;  %1054 = vrcp.f32 %v245_v3  ;;  %v265_v31 = vrot.slane %v264_v23, 1  ;;  %v1142_v19 = vmov 6  }
  0xfb   :  { %v1047_v25 = vpop.eup %1046  ;;  %1056 = vrcp.f32 %v252_v4  ;;  %v347_v22 = vlaneseq }
  0xfc   :  { %v1049_v26 = vpop.eup %1048  ;;  %v258_v29 = vrot.slane %v257_v24, 1  ;;  %v277_v34 = vmul.f32 %v1047_v25, %v231_v50  ;;  %v266_v41 = vadd.f32 %v265_v31, %v264_v23 }
  0xfd   :  { %v275_v30 = vmul.f32 %v1049_v26, %v217_v56 }
  0xfe   :  { %v259_v32 = vadd.f32 %v258_v29, %v257_v24  ;;  %v285_v43 = vsub.f32 2.0, %v277_v34 }
  0xff   :  { %v1051_v33 = vpop.eup %1050  ;;  %v283_v35 = vsub.f32 2.0, %v275_v30 }
 0x100   :  { %v1053_v36 = vpop.eup %1052  ;;  %1058 = vrcp.f32 %v259_v32  ;;  %v278_v42 = vmul.f32 %v1051_v33, %v238_v1  ;;  %v293_v52 = vmul.f32 %v1047_v25, %v285_v43 }
 0x101   :  { %v291_v38 = vmul.f32 %v1049_v26, %v283_v35  ;;  %v276_v39 = vmul.f32 %v1053_v36, %v224_v11  ;;  %1060 = vrcp.f32 %v266_v41 }
 0x102   :  { %v286_v50 = vsub.f32 2.0, %v278_v42  ;;  %v1284_v60 = vmul.f32 %v1242_v16, %v293_v52 }
 0x103   :  { %v1275_v44 = vmul.f32 %v1244_v20, %v291_v38  ;;  %v284_v47 = vsub.f32 2.0, %v276_v39 }
 0x104   :  { %v1055_v48 = vpop.eup %1054  ;;  %v294_v61 = vmul.f32 %v1051_v33, %v286_v50 }
 0x105   :  { %v292_v49 = vmul.f32 %v1053_v36, %v284_v47  ;;  %309 = vperm.xlu0 %1007, %v1275_v44   ;;  %v279_v51 = vmul.f32 %v1055_v48, %v245_v3  ;;  %v1057_v45 = vpop.eup %1056  ;;  %v1358_v3 = vshrl.u32 %v347_v22, 7 }
 0x106   :  { %v280_v62 = vmul.f32 %v1057_v45, %v252_v4  ;;  %v1292_v7 = vmul.f32 %v1250_v27, %v294_v61  ;;  %v1138_v27 = vmov 2  }
 0x107   :  { %v1279_v56 = vmul.f32 %v1252_v28, %v292_v49  ;;  %v287_v46 = vsub.f32 2.0, %v279_v51  ;;  %v1362_v4 = vsub.s32 0, %v1358_v3  ;;  %v1373_v29 = vsub.s32 1, %v1358_v3 }
 0x108   :  { %v288_v8 = vsub.f32 2.0, %v280_v62  ;;  %v1383_v36 = vsub.s32 2, %v1358_v3 }
 0x109   :  { %314 = vperm.xlu1 %1008, %v1279_v56   ;;  %1010 = vset.pattern.permute.xlu0 %v1137_v58  ;;  %v295_v59 = vmul.f32 %v1055_v48, %v287_v46  ;;  %v350_v23 = vrot.slane %v1204_v2, %v1362_v4  ;;  %v438_v31 = vrot.slane %v1216_v10, %v1373_v29 }
 0x10a   :  { %v1059_v20 = vpop.eup %1058  ;;  %392 = vperm.xlu0 %1010, %v1279_v56   ;;  %v296_v13 = vmul.f32 %v1057_v45, %v288_v8  ;;  %v366_v38 = vrot.slane %v1216_v10, %v1362_v4  ;;  %v502_v43 = vrot.slane %v1204_v2, %v1383_v36  ;;  %v446_v52 = vrot.slane %v1226_v18, %v1373_v29 }
 0x10b   :  { %v281_v63 = vmul.f32 %v1059_v20, %v259_v32  ;;  %v1287_v1 = vmul.f32 %v1260_v40, %v295_v59  ;;  %v1061_v12 = vpop.eup %1060  ;;  %v374_v50 = vrot.slane %v1226_v18, %v1362_v4  ;;  %v422_v61 = vrot.slane %v1204_v2, %v1373_v29 }
 0x10c   :  { %v282_v53 = vmul.f32 %v1061_v12, %v266_v41  ;;  %v1301_v40 = vmul.f32 %v1258_v37, %v296_v13  ;;  %v1139_v37 = vmov 3   ;;  %v430_v8 = vrot.slane %v1199_v0, %v1373_v29 }
 0x10d   :  { %v289_v28 = vsub.f32 2.0, %v281_v63  ;;  %319 = vperm.xlu1 %1008, %v1284_v60   ;;  %v362_v13 = vrot.slane %v1208_v5, %v1362_v4 }
 0x10e   :  { %404 = vperm.xlu0 %1010, %v1287_v1   ;;  %v290_v54 = vsub.f32 2.0, %v282_v53 }
 0x10f   :  { %v297_v11 = vmul.f32 %v1059_v20, %v289_v28  ;;  %v358_v28 = vrot.slane %v1199_v0, %v1362_v4 }
 0x111   :  { %v1295_v16 = vmul.f32 %v1268_v57, %v297_v11  ;;  %324 = vperm.xlu1 %1008, %v1292_v7   ;;  %v298_v57 = vmul.f32 %v1061_v12, %v290_v54  ;;  %v1416_v11 = vsub.s32 3, %v1358_v3 }
 0x113   :  { %412 = vperm.xlu0 %1010, %v1295_v16   ;;  %v1308_v14 = vmul.f32 %v1266_v55, %v298_v57  ;;  %v1140_v55 = vmov 4   ;;  %v434_v57 = vrot.slane %v1208_v5, %v1373_v29 }
 0x115   :  { %329 = vperm.xlu1 %1008, %v1287_v1  }
 0x117   :  { %1011 = vset.pattern.permute.xlu0 %v1138_v27 }
 0x118   :  { %468 = vperm.xlu0 %1011, %v1275_v44  }
 0x119   :  { %334 = vperm.xlu1 %1008, %v1301_v40  }
 0x11c   :  { %480 = vperm.xlu0 %1011, %v1292_v7  }
 0x11d   :  { %339 = vperm.xlu1 %1008, %v1295_v16  }
 0x120   :  { %488 = vperm.xlu0 %1011, %v1301_v40  }
 0x121   :  { %344 = vperm.xlu1 %1008, %v1308_v14  }
 0x124   :  { %496 = vperm.xlu0 %1011, %v1308_v14  }
 0x125   :  { %1009 = vset.pattern.permute.xlu1 %v1137_v58 }
 0x126   :  { %388 = vperm.xlu1 %1009, %v1275_v44  }
 0x128   :  { %1014 = vset.pattern.permute.xlu0 %v1139_v37 }
 0x129   :  { %552 = vperm.xlu0 %1014, %v1279_v56  }
 0x12a   :  { %396 = vperm.xlu1 %1009, %v1284_v60  }
 0x12d   :  { %564 = vperm.xlu0 %1014, %v1287_v1  }
 0x12e   :  { %400 = vperm.xlu1 %1009, %v1292_v7  }
 0x131   :  { %572 = vperm.xlu0 %1014, %v1295_v16  }
 0x132   :  { %408 = vperm.xlu1 %1009, %v1301_v40  }
 0x135   :  { %1015 = vset.pattern.permute.xlu0 %v1140_v55 }
 0x136   :  { %628 = vperm.xlu0 %1015, %v1275_v44   ;;  %416 = vperm.xlu1 %1009, %v1308_v14  }
 0x13a   :  { %636 = vperm.xlu0 %1015, %v1284_v60   ;;  %1012 = vset.pattern.permute.xlu1 %v1138_v27 }
 0x13b   :  { %472 = vperm.xlu1 %1012, %v1279_v56  }
 0x13e   :  { %640 = vperm.xlu0 %1015, %v1292_v7  }
 0x13f   :  { %476 = vperm.xlu1 %1012, %v1284_v60  }
 0x142   :  { %1017 = vset.pattern.permute.xlu0 %v1141_v15 }
 0x143   :  { %712 = vperm.xlu0 %1017, %v1279_v56   ;;  %484 = vperm.xlu1 %1012, %v1287_v1  }
 0x147   :  { %732 = vperm.xlu0 %1017, %v1295_v16   ;;  %492 = vperm.xlu1 %1012, %v1295_v16  }
 0x14b   :  { %736 = vperm.xlu0 %1017, %v1308_v14   ;;  %1013 = vset.pattern.permute.xlu1 %v1139_v37  ;;  %v514_v37 = vrot.slane %v1208_v5, %v1383_v36 }
 0x14c   :  { %548 = vperm.xlu1 %1013, %v1275_v44  }
 0x14f   :  { %1020 = vset.pattern.permute.xlu0 %v1142_v19 }
 0x150   :  { %808 = vperm.xlu0 %1020, %v1301_v40   ;;  %556 = vperm.xlu1 %1013, %v1284_v60  }
 0x154   :  { %800 = vperm.xlu0 %1020, %v1292_v7   ;;  %560 = vperm.xlu1 %1013, %v1292_v7  }
 0x158   :  { %1021 = vset.pattern.permute.xlu0 %v1143_v21  ;;  %568 = vperm.xlu1 %1013, %v1301_v40  }
 0x159   :  { %872 = vperm.xlu0 %1021, %v1279_v56  }
 0x15c   :  { %576 = vperm.xlu1 %1013, %v1308_v14  }
 0x15d   :  { %892 = vperm.xlu0 %1021, %v1295_v16  }
 0x160   :  { %1016 = vset.pattern.permute.xlu1 %v1140_v55 }
 0x161   :  { %896 = vperm.xlu0 %1021, %v1308_v14   ;;  %632 = vperm.xlu1 %1016, %v1279_v56  }
 0x165   :  { %1024 = vset.pattern.permute.xlu0 %v1141_v15  ;;  %648 = vperm.xlu1 %1016, %v1301_v40  }
 0x166   :  { %708 = vperm.xlu0 %1024, %v1275_v44  }
 0x169   :  { %652 = vperm.xlu1 %1016, %v1295_v16  }
 0x16a   :  { %1027 = vset.pattern.permute.xlu0 %v1142_v19 }
 0x16b   :  { %804 = vperm.xlu0 %1027, %v1287_v1  }
 0x16d   :  { %656 = vperm.xlu1 %1016, %v1308_v14  }
 0x16f   :  { %1029 = vset.pattern.permute.xlu0 %v1143_v21 }
 0x171   :  { %1018 = vset.pattern.permute.xlu1 %v1141_v15 }
 0x172   :  { %728 = vperm.xlu1 %1018, %v1301_v40  }
 0x176   :  { %716 = vperm.xlu1 %1018, %v1284_v60  }
 0x17a   :  { %720 = vperm.xlu1 %1018, %v1292_v7  }
 0x17e   :  { %1019 = vset.pattern.permute.xlu1 %v1142_v19 }
 0x17f   :  { %792 = vperm.xlu1 %1019, %v1279_v56  }
 0x183   :  { %796 = vperm.xlu1 %1019, %v1284_v60  }
 0x184   :  { %v310_v24 = vpop.permute.xlu0 %309 }
 0x185   :  { %v379_v25 = vmul.f32 %v350_v23, %v310_v24  ;;  %v370_v24 = vrot.slane %v1214_v9, %v1362_v4 }
 0x187   :  { %812 = vperm.xlu1 %1019, %v1295_v16  }
 0x188   :  { %v1370_v26 = vpop.permute.xlu1 %314 }
 0x189   :  { %v1375_v30 = vpop.permute.xlu0 %392 }
 0x18b   :  { %816 = vperm.xlu1 %1019, %v1308_v14  }
 0x18c   :  { %v320_v32 = vpop.permute.xlu1 %319 }
 0x18d   :  { %v405_v33 = vpop.permute.xlu0 %404  ;;  %v381_v54 = vmul.f32 %v358_v28, %v320_v32 }
 0x18e   :  { %v455_v34 = vmul.f32 %v438_v31, %v405_v33  ;;  %v442_v31 = vrot.slane %v1214_v9, %v1373_v29 }
 0x18f   :  { %1022 = vset.pattern.permute.xlu1 %v1143_v21 }
 0x190   :  { %v325_v35 = vpop.permute.xlu1 %324  ;;  %888 = vperm.xlu1 %1022, %v1301_v40   ;;  %v598_v40 = vrot.slane %v1216_v10, %v1416_v11 }
 0x191   :  { %v382_v23 = vmul.f32 %v362_v13, %v325_v35  ;;  %v450_v35 = vrot.slane %v1224_v17, %v1373_v29 }
 0x192   :  { %v413_v39 = vpop.permute.xlu0 %412 }
 0x193   :  { %v457_v46 = vmul.f32 %v446_v52, %v413_v39 }
 0x194   :  { %v330_v41 = vpop.permute.xlu1 %329  ;;  %876 = vperm.xlu1 %1022, %v1284_v60  }
 0x195   :  { %v383_v42 = vmul.f32 %v366_v38, %v330_v41 }
 0x197   :  { %v1390_v47 = vadd.f32 %v455_v34, %v383_v42  ;;  %v469_v48 = vpop.permute.xlu0 %468 }
 0x198   :  { %v531_v49 = vmul.f32 %v502_v43, %v469_v48  ;;  %v335_v51 = vpop.permute.xlu1 %334  ;;  %880 = vperm.xlu1 %1022, %v1292_v7  }
 0x199   :  { %v384_v38 = vmul.f32 %v370_v24, %v335_v51  ;;  %v518_v51 = vrot.slane %v1216_v10, %v1383_v36 }
 0x19b   :  { %v481_v56 = vpop.permute.xlu0 %480 }
 0x19c   :  { %v340_v45 = vpop.permute.xlu1 %339  ;;  %1023 = vset.pattern.permute.xlu1 %v1140_v55  ;;  %v534_v32 = vmul.f32 %v514_v37, %v481_v56 }
 0x19d   :  { %v385_v58 = vmul.f32 %v374_v50, %v340_v45  ;;  %644 = vperm.xlu1 %1023, %v1287_v1  }
 0x19f   :  { %v1399_v20 = vadd.f32 %v457_v46, %v385_v58  ;;  %v1401_v59 = vpop.permute.xlu0 %488 }
 0x1a0   :  { %v345_v60 = vpop.permute.xlu1 %344 }
 0x1a1   :  { %1025 = vset.pattern.permute.xlu1 %v1141_v15 }
 0x1a2   :  { %724 = vperm.xlu1 %1025, %v1287_v1  }
 0x1a3   :  { %v1407_v62 = vpop.permute.xlu0 %496 }
 0x1a5   :  { %v389_v63 = vpop.permute.xlu1 %388 }
 0x1a6   :  { %v451_v7 = vmul.f32 %v422_v61, %v389_v63  ;;  %1026 = vset.pattern.permute.xlu1 %v1142_v19  ;;  %v1455_v63 = vsub.s32 4, %v1358_v3 }
 0x1a7   :  { %788 = vperm.xlu1 %1026, %v1275_v44  }
 0x1a8   :  { %v459_v12 = vadd.f32 %v451_v7, %v379_v25  ;;  %v1418_v16 = vpop.permute.xlu0 %552  ;;  %v662_v10 = vrot.slane %v1204_v2, %v1455_v63 }
 0x1a9   :  { %v397_v53 = vpop.permute.xlu1 %396 }
 0x1aa   :  { %v453_v27 = vmul.f32 %v430_v8, %v397_v53  ;;  %v539_v14 = vadd.f32 %v531_v49, %v459_v12  ;;  %v582_v8 = vrot.slane %v1204_v2, %v1416_v11 }
 0x1ab   :  { %1028 = vset.pattern.permute.xlu1 %v1143_v21  ;;  %v378_v21 = vrot.slane %v1224_v17, %v1362_v4 }
 0x1ac   :  { %v461_v55 = vadd.f32 %v453_v27, %v381_v54  ;;  %v565_v15 = vpop.permute.xlu0 %564  ;;  %868 = vperm.xlu1 %1028, %v1275_v44  }
 0x1ad   :  { %v615_v19 = vmul.f32 %v598_v40, %v565_v15  ;;  %v401_v22 = vpop.permute.xlu1 %400  ;;  %v386_v42 = vmul.f32 %v378_v21, %v345_v60  ;;  %v506_v21 = vrot.slane %v1210_v6, %v1383_v36 }
 0x1ae   :  { %v454_v25 = vmul.f32 %v434_v57, %v401_v22 }
 0x1b0   :  { %v462_v33 = vadd.f32 %v454_v25, %v382_v23  ;;  %884 = vperm.xlu1 %1028, %v1287_v1   ;;  %v510_v1 = vrot.slane %v1199_v0, %v1383_v36  ;;  %v1451_v61 = vpop.permute.xlu0 %572 }
 0x1b1   :  { %v409_v34 = vpop.permute.xlu1 %408 }
 0x1b2   :  { %v456_v44 = vmul.f32 %v442_v31, %v409_v34  ;;  %v1439_v39 = vadd.f32 %v534_v32, %v462_v33  ;;  %v426_v31 = vrot.slane %v1210_v6, %v1373_v29  ;;  %v666_v29 = vrot.slane %v1210_v6, %v1455_v63 }
 0x1b4   :  { %v1441_v41 = vadd.f32 %v456_v44, %v384_v38  ;;  %v452_v38 = vmul.f32 %v426_v31, %v1375_v30 }
 0x1b5   :  { %v417_v43 = vpop.permute.xlu1 %416  ;;  %v629_v12 = vpop.permute.xlu0 %628 }
 0x1b6   :  { %v458_v48 = vmul.f32 %v450_v35, %v417_v43  ;;  %v691_v40 = vmul.f32 %v662_v10, %v629_v12  ;;  %v526_v12 = vrot.slane %v1226_v18, %v1383_v36 }
 0x1b8   :  { %v1443_v49 = vadd.f32 %v458_v48, %v386_v42 }
 0x1b9   :  { %v1469_v37 = vpop.permute.xlu0 %636 }
 0x1ba   :  { %v473_v52 = vpop.permute.xlu1 %472 }
 0x1bb   :  { %v532_v44 = vmul.f32 %v506_v21, %v473_v52 }
 0x1bd   :  { %v1471_v15 = vpop.permute.xlu0 %640 }
 0x1be   :  { %v477_v50 = vpop.permute.xlu1 %476 }
 0x1bf   :  { %v533_v56 = vmul.f32 %v510_v1, %v477_v50  ;;  %v1498_v1 = vsub.s32 5, %v1358_v3 }
 0x1c1   :  { %v1449_v45 = vadd.f32 %v533_v56, %v461_v55  ;;  %v746_v56 = vrot.slane %v1210_v6, %v1498_v1 }
 0x1c2   :  { %v485_v46 = vpop.permute.xlu1 %484  ;;  %v713_v22 = vpop.permute.xlu0 %712 }
 0x1c3   :  { %v535_v58 = vmul.f32 %v518_v51, %v485_v46  ;;  %v1508_v51 = vsub.s32 6, %v1358_v3  ;;  %v1511_v46 = vsub.s32 7, %v1358_v3  ;;  %v522_v3 = vrot.slane %v1214_v9, %v1383_v36 }
 0x1c5   :  { %v543_v60 = vadd.f32 %v535_v58, %v1390_v47  ;;  %v826_v10 = vrot.slane %v1210_v6, %v1508_v51 }
 0x1c6   :  { %v493_v28 = vpop.permute.xlu1 %492  ;;  %v1475_v24 = vpop.permute.xlu0 %732 }
 0x1c7   :  { %v1457_v7 = vadd.f32 %v615_v19, %v543_v60  ;;  %v537_v31 = vmul.f32 %v526_v12, %v493_v28  ;;  %v1062_v12 = vld [vmem:[#allocation4 + $0x28] sm:$0xff] }
 0x1ca   :  { %v1483_v32 = vpop.permute.xlu0 %736 }
 0x1cb   :  { %v549_v13 = vpop.permute.xlu1 %548 }
 0x1cc   :  { %v611_v53 = vmul.f32 %v582_v8, %v549_v13  ;;  %v906_v13 = vrot.slane %v1210_v6, %v1511_v46 }
 0x1ce   :  { %v619_v54 = vadd.f32 %v611_v53, %v539_v14  ;;  %v354_v14 = vrot.slane %v1210_v6, %v1362_v4  ;;  %v586_v4 = vrot.slane %v1210_v6, %v1416_v11 }
 0x1cf   :  { %v1463_v27 = vpop.permute.xlu1 %556  ;;  %v1491_v43 = vpop.permute.xlu0 %808 }
 0x1d0   :  { %v1465_v47 = vadd.f32 %v691_v40, %v619_v54  ;;  %v380_v34 = vmul.f32 %v354_v14, %v1370_v26  ;;  %v612_v26 = vmul.f32 %v586_v4, %v1418_v16  ;;  %v772_v16 = vmul.f32 %v746_v56, %v713_v22 }
 0x1d1   :  { %v602_v14 = vrot.slane %v1214_v9, %v1416_v11  ;;  %v530_v22 = vrot.slane %v1224_v17, %v1383_v36  ;;  %v686_v4 = vrot.slane %v1226_v18, %v1455_v63  ;;  %v670_v36 = vrot.slane %v1199_v0, %v1455_v63 }
 0x1d2   :  { %v460_v42 = vadd.f32 %v452_v38, %v380_v34  ;;  %v682_v38 = vrot.slane %v1214_v9, %v1455_v63  ;;  %v545_v56 = vadd.f32 %v537_v31, %v1399_v20  ;;  %v1065_v31 = vld [vmem:[#allocation4 + $0x30] sm:$0xff] }
 0x1d3   :  { %v1467_v57 = vpop.permute.xlu1 %560  ;;  %v1503_v52 = vpop.permute.xlu0 %800 }
 0x1d4   :  { %v540_v48 = vadd.f32 %v532_v44, %v460_v42  ;;  %v606_v44 = vrot.slane %v1226_v18, %v1416_v11  ;;  %v590_v42 = vrot.slane %v1199_v0, %v1416_v11  ;;  %v766_v0 = vrot.slane %v1226_v18, %v1498_v1 }
 0x1d6   :  { %v620_v58 = vadd.f32 %v612_v26, %v540_v48  ;;  %v762_v26 = vrot.slane %v1214_v9, %v1498_v1  ;;  %v770_v9 = vrot.slane %v1224_v17, %v1498_v1  ;;  %v617_v20 = vmul.f32 %v606_v44, %v1451_v61 }
 0x1d7   :  { %v569_v55 = vpop.permute.xlu1 %568 }
 0x1d8   :  { %v873_v53 = vpop.permute.xlu0 %872  ;;  %v616_v48 = vmul.f32 %v602_v14, %v569_v55 }
 0x1d9   :  { %v932_v21 = vmul.f32 %v906_v13, %v873_v53  ;;  %v842_v13 = vrot.slane %v1062_v12, %v1508_v51 }
 0x1db   :  { %v1473_v19 = vpop.permute.xlu1 %576 }
 0x1e0   :  { %v633_v2 = vpop.permute.xlu1 %632 }
 0x1e1   :  { %v692_v30 = vmul.f32 %v666_v29, %v633_v2  ;;  %v536_v29 = vmul.f32 %v522_v3, %v1401_v59 }
 0x1e3   :  { %v700_v8 = vadd.f32 %v692_v30, %v620_v58  ;;  %v674_v30 = vrot.slane %v1208_v5, %v1455_v63  ;;  %v594_v58 = vrot.slane %v1208_v5, %v1416_v11  ;;  %v544_v59 = vadd.f32 %v536_v29, %v1441_v41 }
 0x1e4   :  { %v649_v23 = vpop.permute.xlu1 %648  ;;  %v613_v5 = vmul.f32 %v590_v42, %v1463_v27  ;;  %v538_v41 = vmul.f32 %v530_v22, %v1407_v62  ;;  %v625_v27 = vadd.f32 %v617_v20, %v545_v56  ;;  %v922_v42 = vrot.slane %v1062_v12, %v1511_v46 }
 0x1e5   :  { %v780_v54 = vadd.f32 %v772_v16, %v700_v8  ;;  %v610_v8 = vrot.slane %v1224_v17, %v1416_v11  ;;  %v696_v55 = vmul.f32 %v682_v38, %v649_v23  ;;  %v690_v11 = vrot.slane %v1224_v17, %v1455_v63  ;;  %v1064_v17 = vld [vmem:[#allocation4 + $0x18] sm:$0xff] }
 0x1e6   :  { %v624_v53 = vadd.f32 %v616_v48, %v544_v59  ;;  %v614_v23 = vmul.f32 %v594_v58, %v1467_v57  ;;  %v754_v14 = vrot.slane %v1064_v17, %v1498_v1  ;;  %v546_v62 = vadd.f32 %v538_v41, %v1443_v49  ;;  %v1066_v38 = vld [vmem:[#allocation4 + $0x38] sm:$0xff]  ;;  %v893_v58 = vpop.permute.xlu0 %892 }
 0x1e7   :  { %v618_v61 = vmul.f32 %v610_v8, %v1473_v19  ;;  %v850_v44 = vrot.slane %v1066_v38, %v1508_v51  ;;  %v856_v49 = vmul.f32 %v842_v13, %v1491_v43  ;;  %v694_v56 = vmul.f32 %v674_v30, %v1471_v15 }
 0x1e8   :  { %v1477_v25 = vpop.permute.xlu1 %652  ;;  %v622_v29 = vadd.f32 %v614_v23, %v1439_v39  ;;  %v778_v43 = vmul.f32 %v770_v9, %v1483_v32  ;;  %v914_v13 = vrot.slane %v1064_v17, %v1511_v46 }
 0x1e9   :  { %v697_v16 = vmul.f32 %v686_v4, %v1477_v25  ;;  %v1063_v25 = vld [vmem:[#allocation4 + $0x10] sm:$0xff]  ;;  %v693_v4 = vmul.f32 %v670_v36, %v1469_v37 }
 0x1ea   :  { %v750_v3 = vrot.slane %v1063_v25, %v1498_v1  ;;  %v830_v22 = vrot.slane %v1063_v25, %v1508_v51  ;;  %v897_v32 = vpop.permute.xlu0 %896 }
 0x1ec   :  { %v1485_v33 = vpop.permute.xlu1 %656 }
 0x1ed   :  { %v698_v57 = vmul.f32 %v690_v11, %v1485_v33  ;;  %v930_v11 = vrot.slane %v1066_v38, %v1511_v46 }
 0x1f1   :  { %v729_v35 = vpop.permute.xlu1 %728 }
 0x1f5   :  { %v1500_v50 = vpop.permute.xlu1 %716 }
 0x1f6   :  { %v773_v48 = vmul.f32 %v750_v3, %v1500_v50  ;;  %v834_v50 = vrot.slane %v1064_v17, %v1508_v51 }
 0x1f8   :  { %v854_v9 = vmul.f32 %v834_v50, %v1503_v52 }
 0x1f9   :  { %v1513_v60 = vpop.permute.xlu1 %720 }
 0x1fa   :  { %v774_v37 = vmul.f32 %v754_v14, %v1513_v60 }
 0x1fe   :  { %v793_v40 = vpop.permute.xlu1 %792 }
 0x1ff   :  { %v852_v2 = vmul.f32 %v826_v10, %v793_v40  ;;  %v926_v40 = vrot.slane %v1226_v18, %v1511_v46  ;;  %v621_v18 = vadd.f32 %v613_v5, %v1449_v45  ;;  %v626_v45 = vadd.f32 %v618_v61, %v546_v62 }
 0x201   :  { %v860_v34 = vadd.f32 %v852_v2, %v780_v54  ;;  %v776_v54 = vmul.f32 %v762_v26, %v729_v35  ;;  %v704_v2 = vadd.f32 %v696_v55, %v624_v53  ;;  %v705_v35 = vadd.f32 %v697_v16, %v625_v27 }
 0x202   :  { %v1529_v6 = vpop.permute.xlu1 %796  ;;  %v910_v26 = vrot.slane %v1063_v25, %v1511_v46  ;;  %v706_v8 = vadd.f32 %v698_v57, %v626_v45  ;;  %v701_v59 = vadd.f32 %v693_v4, %v621_v18  ;;  %v937_v30 = vmul.f32 %v926_v40, %v893_v58  ;;  %v709_v18 = vpop.permute.xlu0 %708  ;;  %v1068_v57 = vld [vmem:[#allocation4] sm:$0xff] }
 0x203   :  { %v940_v28 = vadd.f32 %v932_v21, %v860_v34  ;;  %v846_v21 = vrot.slane %v1065_v31, %v1508_v51  ;;  %v784_v19 = vadd.f32 %v776_v54, %v704_v2  ;;  %v938_v2 = vmul.f32 %v930_v11, %v897_v32 }
 0x205   :  { %948 = vrot.lane.b32.xlu0 %v940_v28, %s1144_s22  ;;  %v777_v28 = vmul.f32 %v766_v0, %v1475_v24  ;;  %v853_v24 = vmul.f32 %v830_v22, %v1529_v6  ;;  %v864_v39 = vadd.f32 %v856_v49, %v784_v19  ;;  %v702_v0 = vadd.f32 %v694_v56, %v622_v29 }
 0x206   :  { %v813_v10 = vpop.permute.xlu1 %812  ;;  %v786_v6 = vadd.f32 %v778_v43, %v706_v8  ;;  %v742_v19 = vrot.slane %v1068_v57, %v1498_v1  ;;  %v805_v4 = vpop.permute.xlu0 %804 }
 0x207   :  { %v857_v33 = vmul.f32 %v846_v21, %v813_v10  ;;  %v785_v55 = vadd.f32 %v777_v28, %v705_v35  ;;  %v781_v10 = vadd.f32 %v773_v48, %v701_v59  ;;  %v782_v60 = vadd.f32 %v774_v37, %v702_v0 }
 0x208   :  { %v771_v29 = vmul.f32 %v742_v19, %v709_v18 }
 0x209   :  { %v865_v5 = vadd.f32 %v857_v33, %v785_v55  ;;  %v861_v53 = vadd.f32 %v853_v24, %v781_v10  ;;  %v862_v40 = vadd.f32 %v854_v9, %v782_v60 }
 0x20a   :  { %v817_v34 = vpop.permute.xlu1 %816 }
 0x20b   :  { %v858_v16 = vmul.f32 %v850_v44, %v817_v34  ;;  %v945_v61 = vadd.f32 %v937_v30, %v865_v5  ;;  %v1067_v34 = vld [vmem:[#allocation4 + $0x20] sm:$0xff]  ;;  %v822_v44 = vrot.slane %v1068_v57, %v1508_v51 }
 0x20c   :  { %v678_v52 = vrot.slane %v1067_v34, %v1455_v63  ;;  %v758_v35 = vrot.slane %v1067_v34, %v1498_v1  ;;  %v902_v63 = vrot.slane %v1068_v57, %v1511_v46  ;;  %v918_v49 = vrot.slane %v1067_v34, %v1511_v46 }
 0x20d   :  { %v866_v41 = vadd.f32 %v858_v16, %v786_v6  ;;  %v779_v1 = vadd.f32 %v771_v29, %v1465_v47 }
 0x20f   :  { %v889_v20 = vpop.permute.xlu1 %888  ;;  %v946_v17 = vadd.f32 %v938_v2, %v866_v41 }
 0x210   :  { %v936_v36 = vmul.f32 %v922_v42, %v889_v20  ;;  %v838_v42 = vrot.slane %v1067_v34, %v1508_v51 }
 0x212   :  { %v944_v15 = vadd.f32 %v936_v36, %v864_v39  ;;  %v855_v58 = vmul.f32 %v838_v42, %v805_v4 }
 0x213   :  { %v877_v12 = vpop.permute.xlu1 %876 }
 0x214   :  { %v933_v54 = vmul.f32 %v910_v26, %v877_v12  ;;  %960 = vrot.lane.b32.xlu1 %v944_v15, %s1144_s22 }
 0x216   :  { %v941_v23 = vadd.f32 %v933_v54, %v861_v53 }
 0x217   :  { %v881_v27 = vpop.permute.xlu1 %880 }
 0x218   :  { %v934_v25 = vmul.f32 %v914_v13, %v881_v27  ;;  %952 = vrot.lane.b32.xlu0 %v941_v23, %s1145_s0  ;;  %964 = vrot.lane.b32.xlu1 %v945_v61, %s1145_s0 }
 0x21a   :  { %v942_v3 = vadd.f32 %v934_v25, %v862_v40 }
 0x21c   :  { %956 = vrot.lane.b32.xlu0 %v942_v3, %s1146_s23  ;;  %968 = vrot.lane.b32.xlu1 %v946_v17, %s1146_s23  ;;  %v645_v14 = vpop.permute.xlu1 %644 }
 0x21d   :  { %v695_v22 = vmul.f32 %v678_v52, %v645_v14 }
 0x21f   :  { %v703_v45 = vadd.f32 %v695_v22, %v1457_v7 }
 0x221   :  { %v725_v31 = vpop.permute.xlu1 %724 }
 0x222   :  { %v775_v38 = vmul.f32 %v758_v35, %v725_v31 }
 0x224   :  { %v783_v48 = vadd.f32 %v775_v38, %v703_v45 }
 0x226   :  { %v789_v21 = vpop.permute.xlu1 %788  ;;  %v863_v51 = vadd.f32 %v855_v58, %v783_v48 }
 0x227   :  { %v851_v33 = vmul.f32 %v822_v44, %v789_v21 }
 0x229   :  { %v859_v55 = vadd.f32 %v851_v33, %v779_v1 }
 0x22b   :  { %v869_v62 = vpop.permute.xlu1 %868 }
 0x22c   :  { %v931_v8 = vmul.f32 %v902_v63, %v869_v62 }
 0x22e   :  { %v939_v24 = vadd.f32 %v931_v8, %v859_v55 }
 0x22f   :  { %v885_v28 = vpop.permute.xlu1 %884 }
 0x230   :  { %v935_v59 = vmul.f32 %v918_v49, %v885_v28 }
 0x232   :  { %v943_v39 = vadd.f32 %v935_v59, %v863_v51 }
 0x277   :  { %v949_v26 = vpop.permute.xlu0 %948 }
 0x278   :  { %v971_v7 = vsel %vm97_vm0, %v939_v24, %v949_v26 }
 0x286   :  { %v961_v56 = vpop.permute.xlu1 %960 }
 0x287   :  { %v976_v46 = vsel %vm97_vm0, %v943_v39, %v961_v56 }
 0x28a   :  { %v965_v20 = vpop.permute.xlu1 %964  ;;  %v953_v37 = vpop.permute.xlu0 %952 }
 0x28b   :  { %v977_v36 = vsel %vm972_vm2, %v976_v46, %v965_v20  ;;  %v973_v43 = vsel %vm972_vm2, %v971_v7, %v953_v37 }
 0x28e   :  { %v969_v50 = vpop.permute.xlu1 %968  ;;  %v957_v0 = vpop.permute.xlu0 %956 }
 0x28f   :  { %v978_v47 = vsel %vm974_vm3, %v977_v36, %v969_v50  ;;  %v975_v10 = vsel %vm974_vm3, %v973_v43, %v957_v0 }
 0x290   :  { %980 = vst [vmem:[%s1611_s4 + $0x8] sm:$0xff] %v978_v47  ;;  %979 = vst [vmem:[%s1611_s4] sm:$0xff] %v975_v10 }
 0x291   :  { %985 = vsyncpa [#allocation5], 1 }
 0x292   :  { %986 = vsyncpa [#allocation7], 1 }

</bundles_post_ra>
